<compile_context>
chip_gen: v5e
topology: v5e:2x2
jax: 0.10.0
libtpu: 0.0.40
codegen_flags: <defaults>
</compile_context>

<pallas_src>
import functools

import jax
import jax.numpy as jnp
from jax import lax
from jax.experimental import pallas as pl
from jax.experimental.pallas import tpu as pltpu


def _llama_hidden_dim(dim, hidden_dim, multiple_of, ffn_dim_multiplier):
    hidden_dim = int(2 * hidden_dim / 3)
    if ffn_dim_multiplier is not None:
        hidden_dim = int(ffn_dim_multiplier * hidden_dim)
    hidden_dim = multiple_of * ((hidden_dim + multiple_of - 1) // multiple_of)
    return hidden_dim


def _round_up(x, m):
    return (x + m - 1) // m * m


def _pick_row_tile(M, tm_max):
    # Row tile: multiple of 8 (sublane), as large as useful up to tm_max.
    return min(tm_max, _round_up(M, 8))


def _pick_hidden_tile(H, th_max):
    # Hidden-dim tile: a 128-aligned divisor of H (or full H if small /
    # no clean divisor), so blocks obey the (8, 128) layout rules.
    if H <= th_max:
        return H
    for cand in (th_max, 512, 256, 128):
        if cand <= th_max and H % cand == 0:
            return cand
    return H


def _ffn_kernel(x_ref, w1_ref, w3_ref, w2_ref, o_ref, acc_ref):
    # x_ref: (tm, D)   w1_ref/w3_ref: (th, D)   w2_ref: (D, th)
    # o_ref: (tm, D)   acc_ref: (tm, D) f32 scratch accumulator
    k = pl.program_id(1)

    @pl.when(k == 0)
    def _():
        acc_ref[...] = jnp.zeros_like(acc_ref)

    x = x_ref[...]
    # h = x @ W^T with W in PyTorch (out, in) layout -> contract dim 1 of both.
    dn = (((1,), (1,)), ((), ()))
    h1 = lax.dot_general(x, w1_ref[...], dn, preferred_element_type=jnp.float32)
    h3 = lax.dot_general(x, w3_ref[...], dn, preferred_element_type=jnp.float32)
    # SiLU gate: sigmoid goes to the EUP slot and hides under the matmuls.
    gated = (h1 * jax.nn.sigmoid(h1)) * h3
    # Partial contribution of this H-chunk to out = gated @ w2^T.
    acc_ref[...] += lax.dot_general(
        gated.astype(x.dtype), w2_ref[...], dn,
        preferred_element_type=jnp.float32)

    @pl.when(k == pl.num_programs(1) - 1)
    def _():
        o_ref[...] = acc_ref[...].astype(o_ref.dtype)


@functools.partial(jax.jit, static_argnames=("tm_max", "th_max"))
def feed_forward(x, w1, w2, w3, *, tm_max=256, th_max=512):
    """x: (..., D); w1/w3: (H, D); w2: (D, H) — PyTorch nn.Linear layout."""
    orig_shape = x.shape
    D = orig_shape[-1]
    H = w1.shape[0]

    xf = x.reshape(-1, D)
    M = xf.shape[0]

    tm = _pick_row_tile(M, tm_max)
    th = _pick_hidden_tile(H, th_max)

    # Pad the row count up to a multiple of tm (handles ragged token counts).
    Mp = _round_up(M, tm)
    if Mp != M:
        xf = jnp.pad(xf, ((0, Mp - M), (0, 0)))

    grid = (Mp // tm, H // th)

    itemsize = jnp.dtype(x.dtype).itemsize
    cost = pl.CostEstimate(
        flops=6 * Mp * D * H,                      # three M x D x H matmuls
        transcendentals=Mp * H,                    # sigmoid
        bytes_accessed=(2 * Mp * D + 3 * H * D) * itemsize,
    )

    out = pl.pallas_call(
        _ffn_kernel,
        out_shape=jax.ShapeDtypeStruct((Mp, D), x.dtype),
        grid_spec=pltpu.PrefetchScalarGridSpec(
            num_scalar_prefetch=0,
            grid=grid,
            in_specs=[
                pl.BlockSpec((tm, D), lambda i, k: (i, 0)),   # x rows
                pl.BlockSpec((th, D), lambda i, k: (k, 0)),   # w1 H-chunk
                pl.BlockSpec((th, D), lambda i, k: (k, 0)),   # w3 H-chunk
                pl.BlockSpec((D, th), lambda i, k: (0, k)),   # w2 H-chunk
            ],
            out_specs=pl.BlockSpec((tm, D), lambda i, k: (i, 0)),
            scratch_shapes=[pltpu.VMEM((tm, D), jnp.float32)],
        ),
        compiler_params=pltpu.CompilerParams(
            dimension_semantics=("parallel", "arbitrary"),
            vmem_limit_bytes=64 * 1024 * 1024,
        ),
        cost_estimate=cost,
    )(xf, w1, w3, w2)

    if Mp != M:
        out = out[:M]
    return out.reshape(orig_shape)


def _reference(x, w1, w2, w3):
    h1 = x @ w1.T
    h3 = x @ w3.T
    return (h1 * jax.nn.sigmoid(h1) * h3) @ w2.T


if __name__ == "__main__":
    # Module hyper-params (small but TPU-tile friendly).
    dim = 128
    hidden_dim_arg = 4 * dim
    multiple_of = 128
    ffn_dim_multiplier = None
    hidden = _llama_hidden_dim(dim, hidden_dim_arg, multiple_of,
                               ffn_dim_multiplier)  # -> 384

    key = jax.random.PRNGKey(0)
    k_x, k1, k2, k3 = jax.random.split(key, 4)
    batch, seq = 2, 8
    x = jax.random.normal(k_x, (batch, seq, dim), dtype=jnp.float32)
    w1 = jax.random.normal(k1, (hidden, dim), dtype=jnp.float32) * 0.02
    w2 = jax.random.normal(k2, (dim, hidden), dtype=jnp.float32) * 0.02
    w3 = jax.random.normal(k3, (hidden, dim), dtype=jnp.float32) * 0.02

    # f32 run + tight correctness check against the PyTorch-equivalent math.
    out = jax.block_until_ready(feed_forward(x, w1, w2, w3))
    ref = _reference(x, w1, w2, w3)
    assert out.shape == (batch, seq, dim)
    assert jnp.allclose(out, ref, atol=1e-4, rtol=1e-4)

    # Ragged token count (exercises the padded final row tile).
    xr = x[:, :7, :]
    out_r = jax.block_until_ready(feed_forward(xr, w1, w2, w3))
    assert jnp.allclose(out_r, _reference(xr, w1, w2, w3), atol=1e-4, rtol=1e-4)

    # bf16 fast path (2x MXU rate, half the weight traffic); loose tolerance.
    out_bf = jax.block_until_ready(
        feed_forward(x.astype(jnp.bfloat16), w1.astype(jnp.bfloat16),
                     w2.astype(jnp.bfloat16), w3.astype(jnp.bfloat16)))
    assert out_bf.dtype == jnp.bfloat16
    assert jnp.allclose(out_bf.astype(jnp.float32), ref, atol=2e-2, rtol=2e-1)

    print("KERNEL_OK")
</pallas_src>

<mosaic_0001>
module attributes {stable_mosaic.version = 11 : i64} {
  func.func @_ffn_kernel(%arg0: i32, %arg1: i32, %arg2: memref<16x128xf32, #tpu.memory_space<vmem>>, %arg3: memref<384x128xf32, #tpu.memory_space<vmem>>, %arg4: memref<384x128xf32, #tpu.memory_space<vmem>>, %arg5: memref<128x384xf32, #tpu.memory_space<vmem>>, %arg6: memref<16x128xf32, #tpu.memory_space<vmem>>, %arg7: memref<16x128xf32, #tpu.memory_space<vmem>>) attributes {dimension_semantics = [#tpu.dimension_semantics<parallel>, #tpu.dimension_semantics<arbitrary>], iteration_bounds = array<i64: 1, 1>, scalar_prefetch = 0 : i64, scratch_operands = 1 : i64, tpu.core_type = #tpu.core_type<tc>, window_params = [{transform_indices = @transform_0, window_bounds = array<i64: 16, 128>}, {transform_indices = @transform_1, window_bounds = array<i64: 384, 128>}, {transform_indices = @transform_2, window_bounds = array<i64: 384, 128>}, {transform_indices = @transform_3, window_bounds = array<i64: 128, 384>}, {transform_indices = @transform_4, window_bounds = array<i64: 16, 128>}]} {
    %c0_i32 = arith.constant 0 : i32
    %0 = arith.cmpi eq, %arg1, %c0_i32 : i32
    %1 = arith.extui %0 : i1 to i32
    %c0_i32_0 = arith.constant 0 : i32
    %2 = arith.cmpi ne, %1, %c0_i32_0 : i32
    scf.if %2 {
      %cst_17 = arith.constant 0.000000e+00 : f32
      %23 = vector.broadcast %cst_17 : f32 to vector<16x128xf32>
      %c0_18 = arith.constant 0 : index
      %c0_19 = arith.constant 0 : index
      %24 = vector.load %arg7[%c0_18, %c0_19] : memref<16x128xf32, #tpu.memory_space<vmem>>, vector<16x128xf32>
      tpu.vector_store %arg7[%c0_18, %c0_19], %23 {strides = array<i32>} : memref<16x128xf32, #tpu.memory_space<vmem>>, vector<16x128xf32>,
    } else {
    }
    %c0 = arith.constant 0 : index
    %c0_1 = arith.constant 0 : index
    %3 = vector.load %arg2[%c0, %c0_1] : memref<16x128xf32, #tpu.memory_space<vmem>>, vector<16x128xf32>
    %c0_2 = arith.constant 0 : index
    %c0_3 = arith.constant 0 : index
    %4 = vector.load %arg3[%c0_2, %c0_3] : memref<384x128xf32, #tpu.memory_space<vmem>>, vector<384x128xf32>
    %cst = arith.constant dense<0.000000e+00> : vector<16x384xf32>
    %5 = tpu.matmul %3, %4, %cst {dimension_numbers = #tpu.dot_dimension_numbers<[1], [1], [0], [0], [0, 0, 1, 0], [], []>} : vector<16x128xf32>, vector<384x128xf32>, vector<16x384xf32> -> vector<16x384xf32>
    %c0_4 = arith.constant 0 : index
    %c0_5 = arith.constant 0 : index
    %6 = vector.load %arg4[%c0_4, %c0_5] : memref<384x128xf32, #tpu.memory_space<vmem>>, vector<384x128xf32>
    %cst_6 = arith.constant dense<0.000000e+00> : vector<16x384xf32>
    %7 = tpu.matmul %3, %6, %cst_6 {dimension_numbers = #tpu.dot_dimension_numbers<[1], [1], [0], [0], [0, 0, 1, 0], [], []>} : vector<16x128xf32>, vector<384x128xf32>, vector<16x384xf32> -> vector<16x384xf32>
    %8 = arith.negf %5 : vector<16x384xf32>
    %9 = math.exp %8 : vector<16x384xf32>
    %cst_7 = arith.constant 1.000000e+00 : f32
    %10 = vector.broadcast %cst_7 : f32 to vector<16x384xf32>
    %11 = arith.addf %10, %9 : vector<16x384xf32>
    %12 = arith.divf %10, %11 : vector<16x384xf32>
    %13 = arith.mulf %5, %12 : vector<16x384xf32>
    %14 = arith.mulf %13, %7 : vector<16x384xf32>
    %c0_8 = arith.constant 0 : index
    %c0_9 = arith.constant 0 : index
    %15 = vector.load %arg7[%c0_8, %c0_9] : memref<16x128xf32, #tpu.memory_space<vmem>>, vector<16x128xf32>
    %c0_10 = arith.constant 0 : index
    %c0_11 = arith.constant 0 : index
    %16 = vector.load %arg5[%c0_10, %c0_11] : memref<128x384xf32, #tpu.memory_space<vmem>>, vector<128x384xf32>
    %cst_12 = arith.constant dense<0.000000e+00> : vector<16x128xf32>
    %17 = tpu.matmul %14, %16, %cst_12 {dimension_numbers = #tpu.dot_dimension_numbers<[1], [1], [0], [0], [0, 0, 1, 0], [], []>} : vector<16x384xf32>, vector<128x384xf32>, vector<16x128xf32> -> vector<16x128xf32>
    %18 = arith.addf %15, %17 : vector<16x128xf32>
    %c0_13 = arith.constant 0 : index
    %c0_14 = arith.constant 0 : index
    %19 = vector.load %arg7[%c0_13, %c0_14] : memref<16x128xf32, #tpu.memory_space<vmem>>, vector<16x128xf32>
    tpu.vector_store %arg7[%c0_13, %c0_14], %18 {strides = array<i32>} : memref<16x128xf32, #tpu.memory_space<vmem>>, vector<16x128xf32>,
    %c0_i32_15 = arith.constant 0 : i32
    %20 = arith.cmpi eq, %arg1, %c0_i32_15 : i32
    %21 = arith.extui %20 : i1 to i32
    %c0_i32_16 = arith.constant 0 : i32
    %22 = arith.cmpi ne, %21, %c0_i32_16 : i32
    scf.if %22 {
      %c0_17 = arith.constant 0 : index
      %c0_18 = arith.constant 0 : index
      %23 = vector.load %arg7[%c0_17, %c0_18] : memref<16x128xf32, #tpu.memory_space<vmem>>, vector<16x128xf32>
      %c0_19 = arith.constant 0 : index
      %c0_20 = arith.constant 0 : index
      %24 = vector.load %arg6[%c0_19, %c0_20] : memref<16x128xf32, #tpu.memory_space<vmem>>, vector<16x128xf32>
      tpu.vector_store %arg6[%c0_19, %c0_20], %23 {strides = array<i32>} : memref<16x128xf32, #tpu.memory_space<vmem>>, vector<16x128xf32>,
    } else {
    }
    return
  }
  func.func @transform_0(%arg0: i32, %arg1: i32) -> (i32, i32) {
    %c0_i32 = arith.constant 0 : i32
    %c0_i32_0 = arith.constant 0 : i32
    return %arg0, %c0_i32 : i32, i32
  }
  func.func @transform_1(%arg0: i32, %arg1: i32) -> (i32, i32) {
    %c0_i32 = arith.constant 0 : i32
    %c0_i32_0 = arith.constant 0 : i32
    return %arg1, %c0_i32 : i32, i32
  }
  func.func @transform_2(%arg0: i32, %arg1: i32) -> (i32, i32) {
    %c0_i32 = arith.constant 0 : i32
    %c0_i32_0 = arith.constant 0 : i32
    return %arg1, %c0_i32 : i32, i32
  }
  func.func @transform_3(%arg0: i32, %arg1: i32) -> (i32, i32) {
    %c0_i32 = arith.constant 0 : i32
    %c0_i32_0 = arith.constant 0 : i32
    return %c0_i32, %arg1 : i32, i32
  }
  func.func @transform_4(%arg0: i32, %arg1: i32) -> (i32, i32) {
    %c0_i32 = arith.constant 0 : i32
    %c0_i32_0 = arith.constant 0 : i32
    return %arg0, %c0_i32 : i32, i32
  }
}

</mosaic_0001>

<bundles_post_ra>
// kernel: feed_forward.1
= control target key start
LH: loop header
LB: loop body
LE: loop exit
PB: predicated region body
PF: predicated region fallthrough
CT: control target
= control target key end

     0   :  { %9 = vsyncpa [#allocation4], 0  ;;  %s943_s0 = inlined_call_operand.hbm [shape: f32[16,128], index: 0, kind: input, shape index: {}]   ;;  %s944_s1 = inlined_call_operand.hbm [shape: f32[384,128], index: 1, kind: input, shape index: {}]   ;;  %s945_s2 = inlined_call_operand.hbm [shape: f32[384,128], index: 2, kind: input, shape index: {}]   ;;  %s946_s3 = inlined_call_operand.hbm [shape: f32[128,384], index: 3, kind: input, shape index: {}]   ;;  %s947_s4 = inlined_call_operand.hbm [shape: f32[16,128], index: 4, kind: output, shape index: {}]  }
   0x1   :  { %10 = vsyncpa [#allocation7], 0 }
   0x2   :  { %11 = vsyncpa [#allocation10], 0 }
   0x3   :  { %12 = vsyncpa [#allocation5], 0  ;;  %s30_s17 = sshll.u32 %s944_s1, 4  ;;  %s783_s18 = smov [#allocation6]   ;;  %s31_s17 = int_to_ptr.hbm [resolvable:$true] %s30_s17 }
   0x4   :  { %s32_s19 = sshll.u32 %s783_s18, 4  ;;  %s17_s22 = sshll.u32 %s943_s0, 4  ;;  %s33_s19 = int_to_ptr.vmem [resolvable:$true] %s32_s19  ;;  %s18_s22 = int_to_ptr.hbm [resolvable:$true] %s17_s22 }
   0x5   :  { %s784_s23 = smov 128   ;;  %s785_s24 = smov 8  }
   0x6   :  { %38 = dma.hbm_to_vmem [thread:$0]  %s31_s17, 6144, %s33_s19, [#allocation7], %s784_s23, %s784_s23, %s785_s24  }
   0x7   :  { %s786_s25 = smov [#allocation3]   ;;  %s43_s1 = sshll.u32 %s945_s2, 4  ;;  %s44_s1 = int_to_ptr.hbm [resolvable:$true] %s43_s1 }
   0x8   :  { %s19_s26 = sshll.u32 %s786_s25, 4  ;;  %s56_s30 = sshll.u32 %s946_s3, 4  ;;  %s20_s26 = int_to_ptr.vmem [resolvable:$true] %s19_s26  ;;  %s57_s30 = int_to_ptr.hbm [resolvable:$true] %s56_s30 }
   0x9   :  { %25 = dma.hbm_to_vmem [thread:$0]  %s18_s22, 256, %s20_s26, [#allocation4], %s784_s23, %s784_s23, %s785_s24  }
   0xa   :  { %s787_s5 = smov [#allocation8]   ;;  %s788_s7 = smov [#allocation9]  }
   0xb   :  { %s45_s6 = sshll.u32 %s787_s5, 4  ;;  %s58_s2 = sshll.u32 %s788_s7, 4  ;;  %s46_s6 = int_to_ptr.vmem [resolvable:$true] %s45_s6  ;;  %s59_s2 = int_to_ptr.vmem [resolvable:$true] %s58_s2 }
   0xc   :  { %51 = dma.hbm_to_vmem [thread:$0]  %s44_s1, 6144, %s46_s6, [#allocation7], %s784_s23, %s784_s23, %s785_s24  }
   0xd   :  { %s789_s8 = smov 384   ;;  %s790_s9 = smov 24  }
   0xe   :  { %64 = dma.hbm_to_vmem [thread:$0]  %s57_s30, 6144, %s59_s2, [#allocation10], %s789_s8, %s789_s8, %s790_s9  }
   0xf   :  { %775 = dma.done.wait [#allocation4], 256  }
  0x10   :  { %776 = vsyncadd [#allocation4], 4294967040 }
  0x11   :  { %777 = dma.done.wait [#allocation7], 12288  }
  0x12   :  { %778 = vsyncadd [#allocation7], 4294955008 }
  0x13   :  { %779 = dma.done.wait [#allocation10], 6144  }
  0x14   :  { %780 = vsyncadd [#allocation10], 4294961152  ;;  %v104_v0 = vld [vmem:[#allocation6 + $0x78] sm:$0xff]  ;;  %v103_v3 = vld [vmem:[#allocation6 + $0x70] sm:$0xff]  ;;  %s791_s3 = smov [#allocation11]   ;;  %s585_s13 = sshll.u32 %s947_s4, 4  ;;  %s586_s13 = int_to_ptr.hbm [resolvable:$true] %s585_s13 }
  0x15   :  { %v120_v1 = vld [vmem:[#allocation6 + $0xf8] sm:$0xff]  ;;  %137 = vmatpush.xpose.msra.mxu0 %v104_v0  ;;  %v119_v4 = vld [vmem:[#allocation6 + $0xf0] sm:$0xff]  ;;  %v102_v6 = vld [vmem:[#allocation6 + $0x68] sm:$0xff]  ;;  %s583_s10 = sshll.u32 %s791_s3, 4  ;;  %s584_s10 = int_to_ptr.vmem [resolvable:$true] %s583_s10 }
  0x16   :  { %160 = vmatpush.xpose.msra.mxu1 %v120_v1  ;;  %v136_v2 = vld [vmem:[#allocation6 + $0x178] sm:$0xff]  ;;  %v135_v5 = vld [vmem:[#allocation6 + $0x170] sm:$0xff]  ;;  %v118_v7 = vld [vmem:[#allocation6 + $0xe8] sm:$0xff] }
  0x17   :  { %183 = vmatpush.xpose.msra.mxu2 %v136_v2  ;;  %v221_v8 = vld [vmem:[#allocation8 + $0x78] sm:$0xff]  ;;  %v134_v9 = vld [vmem:[#allocation6 + $0x168] sm:$0xff]  ;;  %v220_v10 = vld [vmem:[#allocation8 + $0x70] sm:$0xff] }
  0x18   :  { %254 = vmatpush.xpose.msra.mxu3 %v221_v8  ;;  %v101_v11 = vld [vmem:[#allocation6 + $0x60] sm:$0xff]  ;;  %v219_v14 = vld [vmem:[#allocation8 + $0x68] sm:$0xff]  ;;  %v100_v15 = vld [vmem:[#allocation6 + $0x58] sm:$0xff] }
  0x19   :  { %138 = vmatpush.xpose.msra.mxu0 %v103_v3  ;;  %v117_v12 = vld [vmem:[#allocation6 + $0xe0] sm:$0xff]  ;;  %v116_v16 = vld [vmem:[#allocation6 + $0xd8] sm:$0xff]  ;;  %v99_v19 = vld [vmem:[#allocation6 + $0x50] sm:$0xff] }
  0x1a   :  { %161 = vmatpush.xpose.msra.mxu1 %v119_v4  ;;  %v133_v13 = vld [vmem:[#allocation6 + $0x160] sm:$0xff]  ;;  %v132_v17 = vld [vmem:[#allocation6 + $0x158] sm:$0xff]  ;;  %v115_v20 = vld [vmem:[#allocation6 + $0xd0] sm:$0xff] }
  0x1b   :  { %184 = vmatpush.xpose.msra.mxu2 %v135_v5  ;;  %v218_v18 = vld [vmem:[#allocation8 + $0x60] sm:$0xff]  ;;  %v131_v21 = vld [vmem:[#allocation6 + $0x150] sm:$0xff]  ;;  %v217_v22 = vld [vmem:[#allocation8 + $0x58] sm:$0xff] }
  0x1c   :  { %255 = vmatpush.xpose.msra.mxu3 %v220_v10  ;;  %v98_v23 = vld [vmem:[#allocation6 + $0x48] sm:$0xff]  ;;  %v216_v26 = vld [vmem:[#allocation8 + $0x50] sm:$0xff]  ;;  %v97_v27 = vld [vmem:[#allocation6 + $0x40] sm:$0xff] }
  0x1d   :  { %139 = vmatpush.xpose.msra.mxu0 %v102_v6  ;;  %v114_v24 = vld [vmem:[#allocation6 + $0xc8] sm:$0xff]  ;;  %v113_v28 = vld [vmem:[#allocation6 + $0xc0] sm:$0xff]  ;;  %v96_v31 = vld [vmem:[#allocation6 + $0x38] sm:$0xff] }
  0x1e   :  { %162 = vmatpush.xpose.msra.mxu1 %v118_v7  ;;  %v130_v25 = vld [vmem:[#allocation6 + $0x148] sm:$0xff]  ;;  %v129_v29 = vld [vmem:[#allocation6 + $0x140] sm:$0xff]  ;;  %v112_v32 = vld [vmem:[#allocation6 + $0xb8] sm:$0xff] }
  0x1f   :  { %185 = vmatpush.xpose.msra.mxu2 %v134_v9  ;;  %v215_v30 = vld [vmem:[#allocation8 + $0x48] sm:$0xff]  ;;  %v128_v33 = vld [vmem:[#allocation6 + $0x138] sm:$0xff]  ;;  %v214_v34 = vld [vmem:[#allocation8 + $0x40] sm:$0xff] }
  0x20   :  { %256 = vmatpush.xpose.msra.mxu3 %v219_v14  ;;  %v95_v35 = vld [vmem:[#allocation6 + $0x30] sm:$0xff]  ;;  %v213_v38 = vld [vmem:[#allocation8 + $0x38] sm:$0xff]  ;;  %v94_v39 = vld [vmem:[#allocation6 + $0x28] sm:$0xff] }
  0x21   :  { %140 = vmatpush.xpose.msra.mxu0 %v101_v11  ;;  %v111_v36 = vld [vmem:[#allocation6 + $0xb0] sm:$0xff]  ;;  %v110_v40 = vld [vmem:[#allocation6 + $0xa8] sm:$0xff]  ;;  %v93_v43 = vld [vmem:[#allocation6 + $0x20] sm:$0xff] }
  0x22   :  { %163 = vmatpush.xpose.msra.mxu1 %v117_v12  ;;  %v127_v37 = vld [vmem:[#allocation6 + $0x130] sm:$0xff]  ;;  %v126_v41 = vld [vmem:[#allocation6 + $0x128] sm:$0xff]  ;;  %v109_v44 = vld [vmem:[#allocation6 + $0xa0] sm:$0xff] }
  0x23   :  { %186 = vmatpush.xpose.msra.mxu2 %v133_v13  ;;  %v212_v42 = vld [vmem:[#allocation8 + $0x30] sm:$0xff]  ;;  %v125_v45 = vld [vmem:[#allocation6 + $0x120] sm:$0xff]  ;;  %v211_v46 = vld [vmem:[#allocation8 + $0x28] sm:$0xff] }
  0x24   :  { %257 = vmatpush.xpose.msra.mxu3 %v218_v18  ;;  %v92_v47 = vld [vmem:[#allocation6 + $0x18] sm:$0xff]  ;;  %v210_v50 = vld [vmem:[#allocation8 + $0x20] sm:$0xff]  ;;  %v91_v51 = vld [vmem:[#allocation6 + $0x10] sm:$0xff] }
  0x25   :  { %141 = vmatpush.xpose.msra.mxu0 %v100_v15  ;;  %v108_v48 = vld [vmem:[#allocation6 + $0x98] sm:$0xff]  ;;  %v107_v52 = vld [vmem:[#allocation6 + $0x90] sm:$0xff]  ;;  %v90_v55 = vld [vmem:[#allocation6 + $0x8] sm:$0xff] }
  0x26   :  { %164 = vmatpush.xpose.msra.mxu1 %v116_v16  ;;  %v124_v49 = vld [vmem:[#allocation6 + $0x118] sm:$0xff]  ;;  %v123_v53 = vld [vmem:[#allocation6 + $0x110] sm:$0xff]  ;;  %v106_v56 = vld [vmem:[#allocation6 + $0x88] sm:$0xff] }
  0x27   :  { %187 = vmatpush.xpose.msra.mxu2 %v132_v17  ;;  %v209_v54 = vld [vmem:[#allocation8 + $0x18] sm:$0xff]  ;;  %v122_v57 = vld [vmem:[#allocation6 + $0x108] sm:$0xff]  ;;  %v208_v58 = vld [vmem:[#allocation8 + $0x10] sm:$0xff] }
  0x28   :  { %258 = vmatpush.xpose.msra.mxu3 %v217_v22  ;;  %v89_v59 = vld [vmem:[#allocation6] sm:$0xff]  ;;  %v237_v61 = vld [vmem:[#allocation8 + $0xf8] sm:$0xff]  ;;  %v207_v0 = vld [vmem:[#allocation8 + $0x8] sm:$0xff] }
  0x29   :  { %142 = vmatpush.xpose.msra.mxu0 %v99_v19  ;;  %v105_v60 = vld [vmem:[#allocation6 + $0x80] sm:$0xff]  ;;  %v253_v62 = vld [vmem:[#allocation8 + $0x178] sm:$0xff]  ;;  %v838_v1 = vld [vmem:[#allocation3] sm:$0xff] }
  0x2a   :  { %165 = vmatpush.xpose.msra.mxu1 %v115_v20  ;;  %v121_v63 = vld [vmem:[#allocation6 + $0x100] sm:$0xff]  ;;  %v236_v2 = vld [vmem:[#allocation8 + $0xf0] sm:$0xff]  ;;  %v235_v5 = vld [vmem:[#allocation8 + $0xe8] sm:$0xff] }
  0x2b   :  { %188 = vmatpush.xpose.msra.mxu2 %v131_v21  ;;  %v252_v3 = vld [vmem:[#allocation8 + $0x170] sm:$0xff]  ;;  %v206_v4 = vld [vmem:[#allocation8] sm:$0xff]  ;;  %v251_v6 = vld [vmem:[#allocation8 + $0x168] sm:$0xff] }
  0x2c   :  { %259 = vmatpush.xpose.msra.mxu3 %v216_v26  ;;  %v843_v7 = vld [vmem:[#allocation3 + $0x8] sm:$0xff]  ;;  %v234_v8 = vld [vmem:[#allocation8 + $0xe0] sm:$0xff]  ;;  %v232_v12 = vld [vmem:[#allocation8 + $0xd0] sm:$0xff] }
  0x2d   :  { %143 = vmatpush.xpose.msra.mxu0 %v98_v23  ;;  %v250_v9 = vld [vmem:[#allocation8 + $0x160] sm:$0xff]  ;;  %v233_v10 = vld [vmem:[#allocation8 + $0xd8] sm:$0xff]  ;;  %v248_v13 = vld [vmem:[#allocation8 + $0x150] sm:$0xff] }
  0x2e   :  { %166 = vmatpush.xpose.msra.mxu1 %v114_v24  ;;  %v249_v11 = vld [vmem:[#allocation8 + $0x158] sm:$0xff]  ;;  %v231_v14 = vld [vmem:[#allocation8 + $0xc8] sm:$0xff]  ;;  %v230_v16 = vld [vmem:[#allocation8 + $0xc0] sm:$0xff] }
  0x2f   :  { %189 = vmatpush.xpose.msra.mxu2 %v130_v25  ;;  %v247_v15 = vld [vmem:[#allocation8 + $0x148] sm:$0xff]  ;;  %v246_v17 = vld [vmem:[#allocation8 + $0x140] sm:$0xff]  ;;  %v229_v18 = vld [vmem:[#allocation8 + $0xb8] sm:$0xff] }
  0x30   :  { %260 = vmatpush.xpose.msra.mxu3 %v215_v30  ;;  %v245_v19 = vld [vmem:[#allocation8 + $0x138] sm:$0xff]  ;;  %v228_v20 = vld [vmem:[#allocation8 + $0xb0] sm:$0xff]  ;;  %v227_v22 = vld [vmem:[#allocation8 + $0xa8] sm:$0xff] }
  0x31   :  { %144 = vmatpush.xpose.msra.mxu0 %v97_v27  ;;  %v244_v21 = vld [vmem:[#allocation8 + $0x130] sm:$0xff]  ;;  %v243_v23 = vld [vmem:[#allocation8 + $0x128] sm:$0xff]  ;;  %v226_v25 = vld [vmem:[#allocation8 + $0xa0] sm:$0xff] }
  0x32   :  { %167 = vmatpush.xpose.msra.mxu1 %v113_v28  ;;  %v496_v24 = vld [vmem:[#allocation9 + $0x168] sm:$0xff]  ;;  %v242_v26 = vld [vmem:[#allocation8 + $0x120] sm:$0xff]  ;;  %v497_v27 = vld [vmem:[#allocation9 + $0x170] sm:$0xff] }
  0x33   :  { %190 = vmatpush.xpose.msra.mxu2 %v129_v29  ;;  %v493_v28 = vld [vmem:[#allocation9 + $0x150] sm:$0xff]  ;;  %v225_v29 = vld [vmem:[#allocation8 + $0x98] sm:$0xff] }
  0x34   :  { %261 = vmatpush.xpose.msra.mxu3 %v214_v34  ;;  %v241_v30 = vld [vmem:[#allocation8 + $0x118] sm:$0xff]  ;;  %v487_v34 = vld [vmem:[#allocation9 + $0x120] sm:$0xff] }
  0x35   :  { %145 = vmatpush.xpose.msra.mxu0 %v96_v31  ;;  %v490_v31 = vld [vmem:[#allocation9 + $0x138] sm:$0xff] }
  0x36   :  { %168 = vmatpush.xpose.msra.mxu1 %v112_v32  ;;  %v224_v32 = vld [vmem:[#allocation8 + $0x90] sm:$0xff] }
  0x37   :  { %191 = vmatpush.xpose.msra.mxu2 %v128_v33  ;;  %v240_v33 = vld [vmem:[#allocation8 + $0x110] sm:$0xff] }
  0x38   :  { %262 = vmatpush.xpose.msra.mxu3 %v213_v38  ;;  %v222_v38 = vld [vmem:[#allocation8 + $0x80] sm:$0xff] }
  0x39   :  { %146 = vmatpush.xpose.msra.mxu0 %v95_v35  ;;  %v223_v35 = vld [vmem:[#allocation8 + $0x88] sm:$0xff] }
  0x3a   :  { %169 = vmatpush.xpose.msra.mxu1 %v111_v36  ;;  %v239_v36 = vld [vmem:[#allocation8 + $0x108] sm:$0xff] }
  0x3b   :  { %192 = vmatpush.xpose.msra.mxu2 %v127_v37  ;;  %v484_v37 = vld [vmem:[#allocation9 + $0x108] sm:$0xff] }
  0x3c   :  { %263 = vmatpush.xpose.msra.mxu3 %v212_v42  ;;  %v478_v42 = vld [vmem:[#allocation9 + $0xd8] sm:$0xff] }
  0x3d   :  { %147 = vmatpush.xpose.msra.mxu0 %v94_v39  ;;  %v238_v39 = vld [vmem:[#allocation8 + $0x100] sm:$0xff] }
  0x3e   :  { %170 = vmatpush.xpose.msra.mxu1 %v110_v40  ;;  %v481_v40 = vld [vmem:[#allocation9 + $0xf0] sm:$0xff] }
  0x3f   :  { %193 = vmatpush.xpose.msra.mxu2 %v126_v41  ;;  %v498_v41 = vld [vmem:[#allocation9 + $0x178] sm:$0xff] }
  0x40   :  { %264 = vmatpush.xpose.msra.mxu3 %v211_v46  ;;  %v495_v46 = vld [vmem:[#allocation9 + $0x160] sm:$0xff] }
  0x41   :  { %148 = vmatpush.xpose.msra.mxu0 %v93_v43  ;;  %v475_v43 = vld [vmem:[#allocation9 + $0xc0] sm:$0xff] }
  0x42   :  { %171 = vmatpush.xpose.msra.mxu1 %v109_v44  ;;  %v472_v44 = vld [vmem:[#allocation9 + $0xa8] sm:$0xff] }
  0x43   :  { %194 = vmatpush.xpose.msra.mxu2 %v125_v45  ;;  %v494_v45 = vld [vmem:[#allocation9 + $0x158] sm:$0xff] }
  0x44   :  { %265 = vmatpush.xpose.msra.mxu3 %v210_v50  ;;  %v466_v50 = vld [vmem:[#allocation9 + $0x78] sm:$0xff] }
  0x45   :  { %149 = vmatpush.xpose.msra.mxu0 %v92_v47  ;;  %v469_v47 = vld [vmem:[#allocation9 + $0x90] sm:$0xff] }
  0x46   :  { %172 = vmatpush.xpose.msra.mxu1 %v108_v48  ;;  %v491_v48 = vld [vmem:[#allocation9 + $0x140] sm:$0xff] }
  0x47   :  { %195 = vmatpush.xpose.msra.mxu2 %v124_v49  ;;  %v492_v49 = vld [vmem:[#allocation9 + $0x148] sm:$0xff] }
  0x48   :  { %266 = vmatpush.xpose.msra.mxu3 %v209_v54  ;;  %v485_v54 = vld [vmem:[#allocation9 + $0x110] sm:$0xff] }
  0x49   :  { %150 = vmatpush.xpose.msra.mxu0 %v91_v51  ;;  %v488_v51 = vld [vmem:[#allocation9 + $0x128] sm:$0xff] }
  0x4a   :  { %173 = vmatpush.xpose.msra.mxu1 %v107_v52  ;;  %v489_v52 = vld [vmem:[#allocation9 + $0x130] sm:$0xff] }
  0x4b   :  { %196 = vmatpush.xpose.msra.mxu2 %v123_v53  ;;  %v463_v53 = vld [vmem:[#allocation9 + $0x60] sm:$0xff] }
  0x4c   :  { %267 = vmatpush.xpose.msra.mxu3 %v208_v58  ;;  %v483_v58 = vld [vmem:[#allocation9 + $0x100] sm:$0xff] }
  0x4d   :  { %151 = vmatpush.xpose.msra.mxu0 %v90_v55  ;;  %v486_v55 = vld [vmem:[#allocation9 + $0x118] sm:$0xff] }
  0x4e   :  { %174 = vmatpush.xpose.msra.mxu1 %v106_v56  ;;  %v460_v56 = vld [vmem:[#allocation9 + $0x48] sm:$0xff] }
  0x4f   :  { %197 = vmatpush.xpose.msra.mxu2 %v122_v57  ;;  %v482_v57 = vld [vmem:[#allocation9 + $0xf8] sm:$0xff] }
  0x50   :  { %268 = vmatpush.xpose.msra.mxu3 %v207_v0  ;;  %v477_v0 = vld [vmem:[#allocation9 + $0xd0] sm:$0xff] }
  0x51   :  { %152 = vmatpush.xpose.msra.mxu0 %v89_v59  ;;  %v457_v59 = vld [vmem:[#allocation9 + $0x30] sm:$0xff] }
  0x52   :  { %175 = vmatpush.xpose.msra.mxu1 %v105_v60  ;;  %v479_v60 = vld [vmem:[#allocation9 + $0xe0] sm:$0xff] }
  0x53   :  { %198 = vmatpush.xpose.msra.mxu2 %v121_v63  ;;  %v476_v63 = vld [vmem:[#allocation9 + $0xc8] sm:$0xff] }
  0x54   :  { %153 = vmatmul.f32.vlgmr.msra.gmra.mxu0 %v838_v1  ;;  %269 = vmatpush.xpose.msra.mxu3 %v206_v4  ;;  %v473_v4 = vld [vmem:[#allocation9 + $0xb0] sm:$0xff] }
  0x55   :  { %277 = vmatpush.xpose.msrb.mxu0 %v237_v61  ;;  %176 = vmatmul.f32.vlgmr.msra.gmra.mxu1 %v838_v1  ;;  %v480_v61 = vld [vmem:[#allocation9 + $0xe8] sm:$0xff] }
  0x56   :  { %300 = vmatpush.xpose.msrb.mxu1 %v253_v62  ;;  %199 = vmatmul.f32.vlgmr.msra.gmra.mxu2 %v838_v1  ;;  %v454_v62 = vld [vmem:[#allocation9 + $0x18] sm:$0xff] }
  0x57   :  { %270 = vmatmul.f32.vlgmr.msra.gmra.mxu3 %v838_v1  ;;  %499 = vmatpush.xpose.msrb.mxu2 %v496_v24  ;;  %v462_v24 = vld [vmem:[#allocation9 + $0x58] sm:$0xff] }
  0x58   :  { %522 = vmatpush.xpose.msrb.mxu3 %v497_v27 }
  0x59   :  { %278 = vmatpush.xpose.msrb.mxu0 %v236_v2 }
  0x5a   :  { %301 = vmatpush.xpose.msrb.mxu1 %v252_v3  ;;  %v451_v3 = vld [vmem:[#allocation9] sm:$0xff] }
  0x5b   :  { %500 = vmatpush.xpose.msrb.mxu2 %v493_v28 }
  0x5c   :  { %156 = vmatmul.f32.gmra.mxu0 %v843_v7  ;;  %523 = vmatpush.xpose.msrb.mxu3 %v494_v45 }
  0x5d   :  { %279 = vmatpush.xpose.msrb.mxu0 %v235_v5  ;;  %179 = vmatmul.f32.gmra.mxu1 %v843_v7  ;;  %v474_v5 = vld [vmem:[#allocation9 + $0xb8] sm:$0xff] }
  0x5e   :  { %302 = vmatpush.xpose.msrb.mxu1 %v251_v6  ;;  %202 = vmatmul.f32.gmra.mxu2 %v843_v7 }
  0x5f   :  { %273 = vmatmul.f32.gmra.mxu3 %v843_v7  ;;  %501 = vmatpush.xpose.msrb.mxu2 %v490_v31 }
  0x60   :  { %524 = vmatpush.xpose.msrb.mxu3 %v491_v48 }
  0x61   :  { %280 = vmatpush.xpose.msrb.mxu0 %v234_v8  ;;  %v471_v8 = vld [vmem:[#allocation9 + $0xa0] sm:$0xff] }
  0x62   :  { %303 = vmatpush.xpose.msrb.mxu1 %v250_v9 }
  0x63   :  { %502 = vmatpush.xpose.msrb.mxu2 %v487_v34 }
  0x64   :  { %525 = vmatpush.xpose.msrb.mxu3 %v488_v51 }
  0x65   :  { %281 = vmatpush.xpose.msrb.mxu0 %v233_v10 }
  0x66   :  { %304 = vmatpush.xpose.msrb.mxu1 %v249_v11 }
  0x67   :  { %503 = vmatpush.xpose.msrb.mxu2 %v484_v37 }
  0x68   :  { %526 = vmatpush.xpose.msrb.mxu3 %v485_v54 }
  0x69   :  { %282 = vmatpush.xpose.msrb.mxu0 %v232_v12 }
  0x6a   :  { %305 = vmatpush.xpose.msrb.mxu1 %v248_v13 }
  0x6b   :  { %504 = vmatpush.xpose.msrb.mxu2 %v481_v40 }
  0x6c   :  { %527 = vmatpush.xpose.msrb.mxu3 %v482_v57  ;;  %v453_v57 = vld [vmem:[#allocation9 + $0x10] sm:$0xff] }
  0x6d   :  { %283 = vmatpush.xpose.msrb.mxu0 %v231_v14 }
  0x6e   :  { %306 = vmatpush.xpose.msrb.mxu1 %v247_v15  ;;  %v467_v15 = vld [vmem:[#allocation9 + $0x80] sm:$0xff] }
  0x6f   :  { %505 = vmatpush.xpose.msrb.mxu2 %v478_v42 }
  0x70   :  { %528 = vmatpush.xpose.msrb.mxu3 %v479_v60 }
  0x71   :  { %284 = vmatpush.xpose.msrb.mxu0 %v230_v16  ;;  %v468_v16 = vld [vmem:[#allocation9 + $0x88] sm:$0xff] }
  0x72   :  { %307 = vmatpush.xpose.msrb.mxu1 %v246_v17 }
  0x73   :  { %506 = vmatpush.xpose.msrb.mxu2 %v475_v43 }
  0x74   :  { %529 = vmatpush.xpose.msrb.mxu3 %v476_v63 }
  0x75   :  { %285 = vmatpush.xpose.msrb.mxu0 %v229_v18  ;;  %v464_v18 = vld [vmem:[#allocation9 + $0x68] sm:$0xff] }
  0x76   :  { %308 = vmatpush.xpose.msrb.mxu1 %v245_v19  ;;  %v465_v19 = vld [vmem:[#allocation9 + $0x70] sm:$0xff] }
  0x77   :  { %507 = vmatpush.xpose.msrb.mxu2 %v472_v44  ;;  %v456_v44 = vld [vmem:[#allocation9 + $0x28] sm:$0xff] }
  0x78   :  { %530 = vmatpush.xpose.msrb.mxu3 %v473_v4 }
  0x79   :  { %286 = vmatpush.xpose.msrb.mxu0 %v228_v20 }
  0x7a   :  { %309 = vmatpush.xpose.msrb.mxu1 %v244_v21  ;;  %v461_v21 = vld [vmem:[#allocation9 + $0x50] sm:$0xff] }
  0x7b   :  { %508 = vmatpush.xpose.msrb.mxu2 %v469_v47 }
  0x7d   :  { %287 = vmatpush.xpose.msrb.mxu0 %v227_v22 }
  0x7e   :  { %310 = vmatpush.xpose.msrb.mxu1 %v243_v23 }
  0x7f   :  { %509 = vmatpush.xpose.msrb.mxu2 %v466_v50 }
  0x81   :  { %288 = vmatpush.xpose.msrb.mxu0 %v226_v25 }
  0x82   :  { %311 = vmatpush.xpose.msrb.mxu1 %v242_v26 }
  0x83   :  { %510 = vmatpush.xpose.msrb.mxu2 %v463_v53 }
  0x85   :  { %289 = vmatpush.xpose.msrb.mxu0 %v225_v29 }
  0x86   :  { %312 = vmatpush.xpose.msrb.mxu1 %v241_v30 }
  0x87   :  { %511 = vmatpush.xpose.msrb.mxu2 %v460_v56  ;;  %v452_v56 = vld [vmem:[#allocation9 + $0x8] sm:$0xff] }
  0x89   :  { %290 = vmatpush.xpose.msrb.mxu0 %v224_v32  ;;  %v458_v32 = vld [vmem:[#allocation9 + $0x38] sm:$0xff] }
  0x8a   :  { %313 = vmatpush.xpose.msrb.mxu1 %v240_v33 }
  0x8b   :  { %512 = vmatpush.xpose.msrb.mxu2 %v457_v59 }
  0x8d   :  { %291 = vmatpush.xpose.msrb.mxu0 %v223_v35  ;;  %v459_v35 = vld [vmem:[#allocation9 + $0x40] sm:$0xff] }
  0x8e   :  { %314 = vmatpush.xpose.msrb.mxu1 %v239_v36 }
  0x8f   :  { %513 = vmatpush.xpose.msrb.mxu2 %v454_v62 }
  0x91   :  { %292 = vmatpush.xpose.msrb.mxu0 %v222_v38 }
  0x92   :  { %315 = vmatpush.xpose.msrb.mxu1 %v238_v39 }
  0x93   :  { %514 = vmatpush.xpose.msrb.mxu2 %v451_v3 }
  0x94   :  { %293 = vmatmul.f32.vlgmr.msrb.gmra.mxu0 %v838_v1 }
  0x95   :  { %545 = vmatpush.xpose.msra.mxu0 %v498_v41  ;;  %316 = vmatmul.f32.vlgmr.msrb.gmra.mxu1 %v838_v1 }
  0x96   :  { %606 = vmatpush.xpose.msra.mxu1 %v498_v41  ;;  %v455_v41 = vld [vmem:[#allocation9 + $0x20] sm:$0xff] }
  0x99   :  { %546 = vmatpush.xpose.msra.mxu0 %v495_v46 }
  0x9a   :  { %607 = vmatpush.xpose.msra.mxu1 %v495_v46 }
  0x9c   :  { %296 = vmatmul.f32.gmra.mxu0 %v843_v7 }
  0x9d   :  { %319 = vmatmul.f32.gmra.mxu1 %v843_v7  ;;  %547 = vmatpush.xpose.msra.mxu0 %v492_v49  ;;  %v470_v7 = vld [vmem:[#allocation9 + $0x98] sm:$0xff] }
  0x9e   :  { %608 = vmatpush.xpose.msra.mxu1 %v492_v49  ;;  %531 = vmatpush.xpose.msrb.mxu3 %v470_v7 }
  0xa1   :  { %548 = vmatpush.xpose.msra.mxu0 %v489_v52 }
  0xa2   :  { %609 = vmatpush.xpose.msra.mxu1 %v489_v52  ;;  %532 = vmatpush.xpose.msrb.mxu3 %v467_v15 }
  0xa5   :  { %549 = vmatpush.xpose.msra.mxu0 %v486_v55 }
  0xa6   :  { %610 = vmatpush.xpose.msra.mxu1 %v486_v55  ;;  %533 = vmatpush.xpose.msrb.mxu3 %v464_v18 }
  0xa9   :  { %550 = vmatpush.xpose.msra.mxu0 %v483_v58 }
  0xaa   :  { %611 = vmatpush.xpose.msra.mxu1 %v483_v58  ;;  %534 = vmatpush.xpose.msrb.mxu3 %v461_v21 }
  0xad   :  { %551 = vmatpush.xpose.msra.mxu0 %v480_v61 }
  0xae   :  { %612 = vmatpush.xpose.msra.mxu1 %v480_v61  ;;  %535 = vmatpush.xpose.msrb.mxu3 %v458_v32 }
  0xb1   :  { %552 = vmatpush.xpose.msra.mxu0 %v477_v0 }
  0xb2   :  { %613 = vmatpush.xpose.msra.mxu1 %v477_v0  ;;  %536 = vmatpush.xpose.msrb.mxu3 %v455_v41 }
  0xb5   :  { %553 = vmatpush.xpose.msra.mxu0 %v474_v5 }
  0xb6   :  { %614 = vmatpush.xpose.msra.mxu1 %v474_v5  ;;  %537 = vmatpush.xpose.msrb.mxu3 %v452_v56 }
  0xb9   :  { %554 = vmatpush.xpose.msra.mxu0 %v471_v8 }
  0xba   :  { %615 = vmatpush.xpose.msra.mxu1 %v471_v8 }
  0xbd   :  { %555 = vmatpush.xpose.msra.mxu0 %v468_v16 }
  0xbe   :  { %616 = vmatpush.xpose.msra.mxu1 %v468_v16 }
  0xc1   :  { %556 = vmatpush.xpose.msra.mxu0 %v465_v19 }
  0xc2   :  { %617 = vmatpush.xpose.msra.mxu1 %v465_v19 }
  0xc5   :  { %557 = vmatpush.xpose.msra.mxu0 %v462_v24 }
  0xc6   :  { %618 = vmatpush.xpose.msra.mxu1 %v462_v24 }
  0xc9   :  { %558 = vmatpush.xpose.msra.mxu0 %v459_v35 }
  0xca   :  { %619 = vmatpush.xpose.msra.mxu1 %v459_v35 }
  0xcd   :  { %559 = vmatpush.xpose.msra.mxu0 %v456_v44 }
  0xce   :  { %620 = vmatpush.xpose.msra.mxu1 %v456_v44 }
  0xd1   :  { %v854_v1 = vpop.f32.mrf.mxu0  ;;  %560 = vmatpush.xpose.msra.mxu0 %v453_v57 }
  0xd2   :  { %v600_v2 = vmul.f32 -1.442695, %v854_v1  ;;  %v857_v6 = vpop.f32.mrf.mxu1  ;;  %621 = vmatpush.xpose.msra.mxu1 %v453_v57 }
  0xd3   :  { %v601_v14 = vmul.f32 -1.442695, %v857_v6 }
  0xd4   :  { %631 = vpow2.f32 %v600_v2 }
  0xd9   :  { %v859_v9 = vpop.f32.mrf.mxu0  ;;  %v862_v12 = vpop.f32.mrf.mxu2 }
  0xda   :  { %v632_v10 = vpop.eup %631  ;;  %v603_v11 = vmul.f32 -1.442695, %v859_v9  ;;  %v602_v17 = vmul.f32 -1.442695, %v862_v12  ;;  %v866_v20 = vpop.f32.mrf.mxu1 }
  0xdb   :  { %v341_v13 = vadd.f32 1.0, %v632_v10  ;;  %v604_v28 = vmul.f32 -1.442695, %v866_v20  ;;  %v271_v46 = vpop.f32.mrf.mxu3 }
  0xdc   :  { %633 = vpow2.f32 %v603_v11 }
  0xdd   :  { %635 = vrcp.f32 %v341_v13  ;;  %v358_v30 = vand.u32 2147483648, %v341_v13  ;;  %vm352_vm0 = vweird.f32 %v341_v13  ;;  %v356_v34 = vand.u32 2147483647, %v341_v13 }
  0xde   :  { %637 = vpow2.f32 %v601_v14 }
  0xdf   :  { %639 = vpow2.f32 %v602_v17  ;;  %v359_v40 = vor.u32 1.1754944e-38, %v358_v30  ;;  %vm357_vm3 = vcmp.eq.f32.partialorder %v356_v34, 8.507059e+37 }
  0xe1   :  { %v868_v23 = vpop.f32.mrf.mxu2 }
  0xe2   :  { %v634_v22 = vpop.eup %633  ;;  %v605_v31 = vmul.f32 -1.442695, %v868_v23 }
  0xe3   :  { %v636_v25 = vpop.eup %635  ;;  %v344_v26 = vadd.f32 1.0, %v634_v22  ;;  %v274_v4 = vpop.f32.mrf.mxu3 }
  0xe4   :  { %v348_v27 = vmul.f32 %v636_v25, %v341_v13  ;;  %v638_v29 = vpop.eup %637  ;;  %vm353_vm1 = vweird.f32 %v636_v25 }
  0xe5   :  { %641 = vrcp.f32 %v344_v26  ;;  %v640_v36 = vpop.eup %639  ;;  %v872_v38 = vadd.f32 1.0, %v638_v29  ;;  %vm874_vm2 = vmor %vm352_vm0, %vm353_vm1  ;;  %vm397_vm4 = vweird.f32 %v344_v26  ;;  %v401_v50 = vand.u32 2147483647, %v344_v26 }
  0xe6   :  { %v349_v33 = vsub.f32 1.0, %v348_v27  ;;  %643 = vpow2.f32 %v604_v28  ;;  %v878_v43 = vadd.f32 1.0, %v640_v36  ;;  %v403_v51 = vand.u32 2147483648, %v344_v26 }
  0xe7   :  { %645 = vpow2.f32 %v605_v31  ;;  %vm402_vm7 = vcmp.eq.f32.partialorder %v401_v50, 8.507059e+37  ;;  %vm367_vm8 = vweird.f32 %v872_v38  ;;  %v373_v21 = vand.u32 2147483648, %v872_v38 }
  0xe8   :  { %v350_v37 = vmul.f32 %v636_v25, %v349_v33  ;;  %647 = vrcp.f32 %v872_v38  ;;  %v404_v59 = vor.u32 1.1754944e-38, %v403_v51  ;;  %vm382_vm10 = vweird.f32 %v878_v43 }
  0xe9   :  { %649 = vrcp.f32 %v878_v43  ;;  %v386_v22 = vand.u32 2147483647, %v878_v43  ;;  %v388_v24 = vand.u32 2147483648, %v878_v43  ;;  %v374_v31 = vor.u32 1.1754944e-38, %v373_v21 }
  0xea   :  { %v351_v42 = vadd.f32 %v636_v25, %v350_v37 }
  0xeb   :  { %v642_v45 = vpop.eup %641  ;;  %vm387_vm15 = vcmp.eq.f32.partialorder %v386_v22, 8.507059e+37  ;;  %v389_v32 = vor.u32 1.1754944e-38, %v388_v24 }
  0xec   :  { %v355_v47 = vsel %vm874_vm2, %v636_v25, %v351_v42  ;;  %v393_v48 = vmul.f32 %v642_v45, %v344_v26  ;;  %v644_v52 = vpop.eup %643  ;;  %vm398_vm5 = vweird.f32 %v642_v45 }
  0xed   :  { %v360_v49 = vsel %vm357_vm3, %v359_v40, %v355_v47  ;;  %v646_v55 = vpop.eup %645  ;;  %vm399_vm6 = vmor %vm397_vm4, %vm398_vm5  ;;  %v886_v60 = vadd.f32 1.0, %v644_v52 }
  0xee   :  { %v437_v53 = vmul.f32 %v360_v49, %v854_v1  ;;  %v394_v54 = vsub.f32 1.0, %v393_v48  ;;  %v648_v61 = vpop.eup %647  ;;  %v888_v63 = vadd.f32 1.0, %v646_v55 }
  0xef   :  { %v650_v1 = vpop.eup %649  ;;  %651 = vrcp.f32 %v886_v60  ;;  %v363_v7 = vmul.f32 %v648_v61, %v872_v38  ;;  %vm368_vm9 = vweird.f32 %v648_v61  ;;  %vm412_vm0 = vweird.f32 %v886_v60 }
  0xf0   :  { %v395_v58 = vmul.f32 %v642_v45, %v394_v54  ;;  %v443_v0 = vmul.f32 %v437_v53, %v271_v46  ;;  %653 = vrcp.f32 %v888_v63  ;;  %v378_v8 = vmul.f32 %v650_v1, %v878_v43  ;;  %vm903_vm12 = vmor %vm367_vm8, %vm368_vm9 }
  0xf1   :  { %v364_v13 = vsub.f32 1.0, %v363_v7  ;;  %vm383_vm11 = vweird.f32 %v650_v1  ;;  %v416_v37 = vand.u32 2147483647, %v886_v60  ;;  %vm427_vm2 = vweird.f32 %v888_v63 }
  0xf2   :  { %v396_v62 = vadd.f32 %v642_v45, %v395_v58  ;;  %515 = vmatmul.f32.vlgmr.msrb.gmra.mxu2 %v443_v0  ;;  %v379_v14 = vsub.f32 1.0, %v378_v8  ;;  %vm907_vm13 = vmor %vm382_vm10, %vm383_vm11  ;;  %v431_v41 = vand.u32 2147483647, %v888_v63  ;;  %v433_v42 = vand.u32 2147483648, %v888_v63 }
  0xf3   :  { %v365_v16 = vmul.f32 %v648_v61, %v364_v13 }
  0xf4   :  { %v400_v2 = vsel %vm399_vm6, %v642_v45, %v396_v62  ;;  %v380_v18 = vmul.f32 %v650_v1, %v379_v14  ;;  %vm417_vm6 = vcmp.eq.f32.partialorder %v416_v37, 8.507059e+37  ;;  %v434_v50 = vor.u32 1.1754944e-38, %v433_v42 }
  0xf5   :  { %v405_v3 = vsel %vm402_vm7, %v404_v59, %v400_v2  ;;  %v652_v11 = vpop.eup %651  ;;  %v366_v25 = vadd.f32 %v648_v61, %v365_v16  ;;  %vm432_vm7 = vcmp.eq.f32.partialorder %v431_v41, 8.507059e+37 }
  0xf6   :  { %v440_v5 = vmul.f32 %v405_v3, %v859_v9  ;;  %v654_v15 = vpop.eup %653  ;;  %v408_v17 = vmul.f32 %v652_v11, %v886_v60  ;;  %v371_v9 = vand.u32 2147483647, %v872_v38  ;;  %v381_v28 = vadd.f32 %v650_v1, %v380_v18 }
  0xf7   :  { %v423_v19 = vmul.f32 %v654_v15, %v888_v63  ;;  %v370_v33 = vsel %vm903_vm12, %v648_v61, %v366_v25  ;;  %vm413_vm1 = vweird.f32 %v652_v11  ;;  %v418_v38 = vand.u32 2147483648, %v886_v60 }
  0xf8   :  { %v446_v10 = vmul.f32 %v440_v5, %v274_v4  ;;  %v409_v27 = vsub.f32 1.0, %v408_v17  ;;  %vm372_vm14 = vcmp.eq.f32.partialorder %v371_v9, 8.507059e+37  ;;  %v385_v35 = vsel %vm907_vm13, %v650_v1, %v381_v28  ;;  %vm921_vm4 = vmor %vm412_vm0, %vm413_vm1 }
  0xf9   :  { %v424_v29 = vsub.f32 1.0, %v423_v19  ;;  %vm428_vm3 = vweird.f32 %v654_v15  ;;  %v375_v39 = vsel %vm372_vm14, %v374_v31, %v370_v33  ;;  %v390_v40 = vsel %vm387_vm15, %v389_v32, %v385_v35 }
  0xfa   :  { %518 = vmatmul.f32.gmra.mxu2 %v446_v10  ;;  %v410_v34 = vmul.f32 %v652_v11, %v409_v27  ;;  %vm925_vm5 = vmor %vm427_vm2, %vm428_vm3  ;;  %v438_v47 = vmul.f32 %v375_v39, %v857_v6  ;;  %v439_v48 = vmul.f32 %v390_v40, %v862_v12  ;;  %v419_v49 = vor.u32 1.1754944e-38, %v418_v38 }
  0xfb   :  { %v425_v36 = vmul.f32 %v654_v15, %v424_v29 }
  0xfc   :  { %v411_v43 = vadd.f32 %v652_v11, %v410_v34 }
  0xfd   :  { %v426_v45 = vadd.f32 %v654_v15, %v425_v36 }
  0xfe   :  { %v415_v53 = vsel %vm921_vm4, %v652_v11, %v411_v43 }
  0xff   :  { %v430_v54 = vsel %vm925_vm5, %v654_v15, %v426_v45  ;;  %v420_v57 = vsel %vm417_vm6, %v419_v49, %v415_v53 }
 0x100   :  { %v435_v6 = vsel %vm432_vm7, %v434_v50, %v430_v54  ;;  %v441_v12 = vmul.f32 %v420_v57, %v866_v20 }
 0x101   :  { %v442_v58 = vmul.f32 %v435_v6, %v868_v23 }
 0x111   :  { %v294_v51 = vpop.f32.mrf.mxu0 }
 0x112   :  { %v317_v52 = vpop.f32.mrf.mxu1  ;;  %v444_v55 = vmul.f32 %v438_v47, %v294_v51 }
 0x113   :  { %v445_v56 = vmul.f32 %v439_v48, %v317_v52 }
 0x114   :  { %538 = vmatmul.f32.vlgmr.msrb.gmra.mxu3 %v444_v55 }
 0x115   :  { %561 = vmatmul.f32.vlgmr.msra.gmra.mxu0 %v445_v56 }
 0x119   :  { %v297_v59 = vpop.f32.mrf.mxu0 }
 0x11a   :  { %v320_v60 = vpop.f32.mrf.mxu1  ;;  %v447_v61 = vmul.f32 %v441_v12, %v297_v59 }
 0x11b   :  { %v448_v62 = vmul.f32 %v442_v58, %v320_v60 }
 0x11c   :  { %541 = vmatmul.f32.gmra.mxu3 %v447_v61 }
 0x11d   :  { %564 = vmatmul.f32.vlgmr.msra.gmra.mxu1 %v448_v62 }
 0x175   :  { %v516_v63 = vpop.f32.mrf.mxu2 }
 0x17d   :  { %v519_v4 = vpop.f32.mrf.mxu2 }
 0x192   :  { %v562_v2 = vpop.f32.mrf.mxu0 }
 0x197   :  { %v539_v0 = vpop.f32.mrf.mxu3 }
 0x198   :  { %v540_v1 = vadd.f32 %v539_v0, %v516_v63 }
 0x19a   :  { %v563_v3 = vadd.f32 %v562_v2, %v540_v1  ;;  %v565_v23 = vpop.f32.mrf.mxu1 }
 0x19c   :  { %577 = vst [vmem:[#allocation11] sm:$0xff] %v563_v3 }
 0x19f   :  { %v542_v5 = vpop.f32.mrf.mxu3 }
 0x1a0   :  { %v543_v20 = vadd.f32 %v542_v5, %v519_v4 }
 0x1a2   :  { %v566_v7 = vadd.f32 %v565_v23, %v543_v20 }
 0x1a4   :  { %578 = vst [vmem:[#allocation11 + $0x8] sm:$0xff] %v566_v7 }
 0x1a5   :  { %591 = dma.vmem_to_hbm [thread:$0]  %s584_s10, 256, %s586_s13, [#allocation5], %s784_s23, %s784_s23, %s785_s24  }
 0x1a6   :  { %781 = dma.done.wait [#allocation5], 256  }
 0x1a7   :  { %782 = vsyncadd [#allocation5], 4294967040 }
 0x1a8   :  { %596 = vsyncpa [#allocation4], 1 }
 0x1a9   :  { %597 = vsyncpa [#allocation7], 1 }
 0x1aa   :  { %598 = vsyncpa [#allocation10], 1 }
 0x1ab   :  { %599 = vsyncpa [#allocation5], 1 }

</bundles_post_ra>
